<compile_context>
chip_gen: v5e
topology: v5e:2x2
jax: 0.10.0
libtpu: 0.0.40
codegen_flags: <defaults>
</compile_context>

<pallas_src>
import math

import jax
import jax.numpy as jnp
from jax import lax
from jax.experimental import pallas as pl
from jax.experimental.pallas import tpu as pltpu


NSEM = 16  # DMA-ring depth for the big-table path (review: 8 was too shallow)


def _round_up(x, m):
    return (x + m - 1) // m * m


def _vmem_capacity_bytes():
    """Physical VMEM of the local TPU generation (fallback: v7x-sized 64 MiB)."""
    try:
        return int(pltpu.get_tpu_info().vmem_capacity_bytes)
    except Exception:
        return 64 * 1024 * 1024


def _choose_tpb(n_tokens, target, row_align):
    """Pick a token-block size (multiple of `row_align`, <= ~target), preferring
    (a) no tail padding (avoids the post-kernel slice copy) and
    (b) >= 2 grid steps (so 'parallel' feeds both v7x TensorCores)."""
    cap = max(row_align, (target // row_align) * row_align)
    cap = min(cap, _round_up(n_tokens, row_align))
    # Exactly two blocks, no padding.
    if n_tokens % (2 * row_align) == 0 and (n_tokens // 2) <= cap:
        return n_tokens // 2
    # Single block, no padding.
    if n_tokens % row_align == 0 and n_tokens <= cap:
        return n_tokens
    # Largest block <= cap dividing n_tokens (no padding); don't shrink below
    # cap//4 just to dodge one padded tail block.
    d = cap
    lo = max(row_align, (cap // 4) // row_align * row_align)
    while d >= lo:
        if n_tokens % d == 0:
            return d
        d -= row_align
    return cap  # fall back to padding + tail slice


# ----------------------------------------------------------------------------
# Fast path: table resident in VMEM, local gather with vector loads/stores.
# ----------------------------------------------------------------------------
def _make_local_gather_kernel(tokens_per_block, pack, d_model):
    """Gather `tokens_per_block` rows from a VMEM-resident table.

    Output tile is lane-packed: `pack` tokens share one (pack*d_model)-wide row.
    The loop is fully unrolled so every destination (row, lane offset) is a
    static index; only the source sublane index is dynamic."""

    def kernel(ids_ref, emb_ref, o_ref):
        # ids_ref : scalar-prefetch SMEM ref, flat (padded) token ids
        # emb_ref : (n_vocab, d_model) table, resident in VMEM (block idx const)
        # o_ref   : (tokens_per_block//pack, pack*d_model) output VMEM tile
        base = pl.program_id(0) * tokens_per_block
        for t in range(tokens_per_block):
            row = ids_ref[base + t]
            r = t // pack
            c = (t % pack) * d_model
            o_ref[pl.ds(r, 1), pl.ds(c, d_model)] = emb_ref[pl.ds(row, 1), :]

    return kernel


# ----------------------------------------------------------------------------
# Slow path: table stays in HBM, per-row DMAs fill the output tile directly.
# ----------------------------------------------------------------------------
def _make_dma_gather_kernel(tokens_per_block, nsem):
    """Gather via a ring of `nsem` in-flight HBM->VMEM row DMAs."""

    def kernel(ids_ref, emb_hbm, o_ref, sems):
        base = pl.program_id(0) * tokens_per_block

        def start_row(t, row):
            pltpu.make_async_copy(
                emb_hbm.at[pl.ds(row, 1), :],
                o_ref.at[pl.ds(t, 1), :],
                sems.at[t % nsem],
            ).start()

        def wait_slot(t):
            # Only the semaphore slot + transfer size matter for the wait; every
            # row copy has identical (1, d_model) shape.
            pltpu.make_async_copy(
                emb_hbm.at[pl.ds(0, 1), :],
                o_ref.at[pl.ds(0, 1), :],
                sems.at[t % nsem],
            ).wait()

        # Prime: issue the first `nsem` row DMAs.
        for t in range(nsem):
            start_row(t, ids_ref[base + t])

        # Steady state: keep `nsem` row DMAs in flight.  Unrolled so the SMEM id
        # read + descriptor build of the next starts co-issue under the wait.
        def body(t, carry):
            row = ids_ref[base + t]  # SMEM read before the wait (sst->sld fwd)
            wait_slot(t)             # frees the slot used by copy t - nsem
            start_row(t, row)
            return carry

        if tokens_per_block > nsem:
            lax.fori_loop(nsem, tokens_per_block, body, 0, unroll=8)

        # Drain all outstanding copies before the tile is written back.
        for t in range(tokens_per_block - nsem, tokens_per_block):
            wait_slot(t)

    return kernel


def embeddings_forward(x_ids, emb_table, *, tokens_per_block=None, nsem=NSEM):
    """x_ids: integer token ids (any shape); emb_table: (n_vocab, d_model)."""
    orig_shape = x_ids.shape
    n_vocab, d_model = emb_table.shape
    n_tokens = math.prod(orig_shape)
    itemsize = emb_table.dtype.itemsize

    flat_ids = x_ids.reshape(n_tokens).astype(jnp.int32)

    cap = _vmem_capacity_bytes()
    table_bytes = n_vocab * d_model * itemsize
    # Fast path if a (possibly double-buffered) resident table leaves headroom.
    fast = (2 * table_bytes) <= int(0.35 * cap)

    # Lane packing (only on the fast path): g tokens per 128-lane output row.
    if fast and d_model < 128 and 128 % d_model == 0:
        g = 128 // d_model
    else:
        g = 1
    row_align = 8 * g  # keeps the packed output block sublane-dim a multiple of 8

    if fast:
        target = tokens_per_block or 256     # fully unrolled in-kernel gather
        out_budget = int(0.20 * cap)
    else:
        target = tokens_per_block or 1024    # fori-loop DMA ring, big blocks OK
        out_budget = int(0.40 * cap)
    max_tpb = max(row_align,
                  (out_budget // (2 * d_model * itemsize)) // row_align * row_align)
    tpb = _choose_tpb(n_tokens, min(target, max_tpb), row_align)
    n_padded = _round_up(n_tokens, tpb)
    grid = (n_padded // tpb,)

    if n_padded != n_tokens:
        # Pad with id 0 (a valid row); padded output rows are sliced off below.
        flat_ids = jnp.pad(flat_ids, (0, n_padded - n_tokens))

    out_block_bytes = tpb * d_model * itemsize
    needed = (2 * table_bytes if fast else 0) + 2 * out_block_bytes
    vmem_limit = min(int(0.9 * cap), needed + (8 << 20))

    compiler_params = pltpu.CompilerParams(
        # Token blocks are fully independent -> shard across TensorCores (v7x).
        dimension_semantics=("parallel",),
        vmem_limit_bytes=vmem_limit,
    )

    if fast:
        out_packed = pl.pallas_call(
            _make_local_gather_kernel(tpb, g, d_model),
            out_shape=jax.ShapeDtypeStruct((n_padded // g, g * d_model),
                                           emb_table.dtype),
            grid_spec=pltpu.PrefetchScalarGridSpec(
                num_scalar_prefetch=1,
                grid=grid,
                in_specs=[
                    # Full-extent block, constant block index -> table is DMA'd
                    # into VMEM once and stays resident across grid steps.
                    pl.BlockSpec((n_vocab, d_model), lambda i, ids: (0, 0)),
                ],
                out_specs=pl.BlockSpec((tpb // g, g * d_model),
                                       lambda i, ids: (i, 0)),
            ),
            compiler_params=compiler_params,
        )(flat_ids, emb_table)
        out_flat = out_packed.reshape(n_padded, d_model)
    else:
        nsem_eff = max(1, min(nsem, tpb))
        out_flat = pl.pallas_call(
            _make_dma_gather_kernel(tpb, nsem_eff),
            out_shape=jax.ShapeDtypeStruct((n_padded, d_model), emb_table.dtype),
            grid_spec=pltpu.PrefetchScalarGridSpec(
                num_scalar_prefetch=1,
                grid=grid,
                in_specs=[
                    # Embedding table stays in HBM; rows are DMA'd manually.
                    pl.BlockSpec(memory_space=pl.ANY),
                ],
                out_specs=pl.BlockSpec((tpb, d_model), lambda i, ids: (i, 0)),
                scratch_shapes=[pltpu.SemaphoreType.DMA((nsem_eff,))],
            ),
            compiler_params=compiler_params,
        )(flat_ids, emb_table)

    if n_padded != n_tokens:
        out_flat = out_flat[:n_tokens]
    return out_flat.reshape(*orig_shape, d_model)


if __name__ == "__main__":
    # Small shapes consistent with the module: batch=2, seq=8, d_model=32.
    batch, seq = 2, 8
    d_model, n_vocab = 32, 100

    key = jax.random.PRNGKey(0)
    k_emb, k_ids = jax.random.split(key)

    # nn.Embedding default init: N(0, 1)
    emb_table = jax.random.normal(k_emb, (n_vocab, d_model), dtype=jnp.float32)
    x_ids = jax.random.randint(k_ids, (batch, seq), 0, n_vocab, dtype=jnp.int32)

    out = embeddings_forward(x_ids, emb_table)
    out = jax.block_until_ready(out)

    # Sanity check against the plain-JAX reference (same semantics as PyTorch).
    ref = emb_table[x_ids]
    assert out.shape == (batch, seq, d_model)
    assert jnp.allclose(out, ref), "Pallas embedding gather mismatch"

    print("KERNEL_OK")
</pallas_src>

<mosaic_0001>
module attributes {stable_mosaic.version = 11 : i64} {
  func.func @kernel(%arg0: i32, %arg1: memref<32xi32, #tpu.memory_space<smem>>, %arg2: memref<100x32xf32, #tpu.memory_space<vmem>>, %arg3: memref<8x128xf32, #tpu.memory_space<vmem>>) attributes {dimension_semantics = [#tpu.dimension_semantics<parallel>], iteration_bounds = array<i64: 1>, scalar_prefetch = 1 : i64, scratch_operands = 0 : i64, tpu.core_type = #tpu.core_type<tc>, window_params = [{pipeline_mode = #tpu.pipeline_mode<synchronous>, transform_indices = @transform_0, window_bounds = array<i64: 100, 32>}, {transform_indices = @transform_1, window_bounds = array<i64: 8, 128>}]} {
    %c32_i32 = arith.constant 32 : i32
    %0 = arith.muli %arg0, %c32_i32 : i32
    %c0_i32 = arith.constant 0 : i32
    %1 = arith.addi %0, %c0_i32 : i32
    %2 = arith.index_cast %1 : i32 to index
    %3 = memref.load %arg1[%2] : memref<32xi32, #tpu.memory_space<smem>>
    %4 = arith.index_cast %3 : i32 to index
    %c0 = arith.constant 0 : index
    %5 = vector.load %arg2[%4, %c0] : memref<100x32xf32, #tpu.memory_space<vmem>>, vector<1x32xf32>
    %c0_0 = arith.constant 0 : index
    %c0_1 = arith.constant 0 : index
    %6 = vector.load %arg3[%c0_0, %c0_1] : memref<8x128xf32, #tpu.memory_space<vmem>>, vector<1x32xf32>
    tpu.vector_store %arg3[%c0_0, %c0_1], %5 {strides = array<i32>} : memref<8x128xf32, #tpu.memory_space<vmem>>, vector<1x32xf32>,
    %c1_i32 = arith.constant 1 : i32
    %7 = arith.addi %0, %c1_i32 : i32
    %8 = arith.index_cast %7 : i32 to index
    %9 = memref.load %arg1[%8] : memref<32xi32, #tpu.memory_space<smem>>
    %10 = arith.index_cast %9 : i32 to index
    %c0_2 = arith.constant 0 : index
    %11 = vector.load %arg2[%10, %c0_2] : memref<100x32xf32, #tpu.memory_space<vmem>>, vector<1x32xf32>
    %c0_3 = arith.constant 0 : index
    %c32 = arith.constant 32 : index
    %12 = vector.load %arg3[%c0_3, %c32] : memref<8x128xf32, #tpu.memory_space<vmem>>, vector<1x32xf32>
    tpu.vector_store %arg3[%c0_3, %c32], %11 {strides = array<i32>} : memref<8x128xf32, #tpu.memory_space<vmem>>, vector<1x32xf32>,
    %c2_i32 = arith.constant 2 : i32
    %13 = arith.addi %0, %c2_i32 : i32
    %14 = arith.index_cast %13 : i32 to index
    %15 = memref.load %arg1[%14] : memref<32xi32, #tpu.memory_space<smem>>
    %16 = arith.index_cast %15 : i32 to index
    %c0_4 = arith.constant 0 : index
    %17 = vector.load %arg2[%16, %c0_4] : memref<100x32xf32, #tpu.memory_space<vmem>>, vector<1x32xf32>
    %c0_5 = arith.constant 0 : index
    %c64 = arith.constant 64 : index
    %18 = vector.load %arg3[%c0_5, %c64] : memref<8x128xf32, #tpu.memory_space<vmem>>, vector<1x32xf32>
    tpu.vector_store %arg3[%c0_5, %c64], %17 {strides = array<i32>} : memref<8x128xf32, #tpu.memory_space<vmem>>, vector<1x32xf32>,
    %c3_i32 = arith.constant 3 : i32
    %19 = arith.addi %0, %c3_i32 : i32
    %20 = arith.index_cast %19 : i32 to index
    %21 = memref.load %arg1[%20] : memref<32xi32, #tpu.memory_space<smem>>
    %22 = arith.index_cast %21 : i32 to index
    %c0_6 = arith.constant 0 : index
    %23 = vector.load %arg2[%22, %c0_6] : memref<100x32xf32, #tpu.memory_space<vmem>>, vector<1x32xf32>
    %c0_7 = arith.constant 0 : index
    %c96 = arith.constant 96 : index
    %24 = vector.load %arg3[%c0_7, %c96] : memref<8x128xf32, #tpu.memory_space<vmem>>, vector<1x32xf32>
    tpu.vector_store %arg3[%c0_7, %c96], %23 {strides = array<i32>} : memref<8x128xf32, #tpu.memory_space<vmem>>, vector<1x32xf32>,
    %c4_i32 = arith.constant 4 : i32
    %25 = arith.addi %0, %c4_i32 : i32
    %26 = arith.index_cast %25 : i32 to index
    %27 = memref.load %arg1[%26] : memref<32xi32, #tpu.memory_space<smem>>
    %28 = arith.index_cast %27 : i32 to index
    %c0_8 = arith.constant 0 : index
    %29 = vector.load %arg2[%28, %c0_8] : memref<100x32xf32, #tpu.memory_space<vmem>>, vector<1x32xf32>
    %c1 = arith.constant 1 : index
    %c0_9 = arith.constant 0 : index
    %30 = vector.load %arg3[%c1, %c0_9] : memref<8x128xf32, #tpu.memory_space<vmem>>, vector<1x32xf32>
    tpu.vector_store %arg3[%c1, %c0_9], %29 {strides = array<i32>} : memref<8x128xf32, #tpu.memory_space<vmem>>, vector<1x32xf32>,
    %c5_i32 = arith.constant 5 : i32
    %31 = arith.addi %0, %c5_i32 : i32
    %32 = arith.index_cast %31 : i32 to index
    %33 = memref.load %arg1[%32] : memref<32xi32, #tpu.memory_space<smem>>
    %34 = arith.index_cast %33 : i32 to index
    %c0_10 = arith.constant 0 : index
    %35 = vector.load %arg2[%34, %c0_10] : memref<100x32xf32, #tpu.memory_space<vmem>>, vector<1x32xf32>
    %c1_11 = arith.constant 1 : index
    %c32_12 = arith.constant 32 : index
    %36 = vector.load %arg3[%c1_11, %c32_12] : memref<8x128xf32, #tpu.memory_space<vmem>>, vector<1x32xf32>
    tpu.vector_store %arg3[%c1_11, %c32_12], %35 {strides = array<i32>} : memref<8x128xf32, #tpu.memory_space<vmem>>, vector<1x32xf32>,
    %c6_i32 = arith.constant 6 : i32
    %37 = arith.addi %0, %c6_i32 : i32
    %38 = arith.index_cast %37 : i32 to index
    %39 = memref.load %arg1[%38] : memref<32xi32, #tpu.memory_space<smem>>
    %40 = arith.index_cast %39 : i32 to index
    %c0_13 = arith.constant 0 : index
    %41 = vector.load %arg2[%40, %c0_13] : memref<100x32xf32, #tpu.memory_space<vmem>>, vector<1x32xf32>
    %c1_14 = arith.constant 1 : index
    %c64_15 = arith.constant 64 : index
    %42 = vector.load %arg3[%c1_14, %c64_15] : memref<8x128xf32, #tpu.memory_space<vmem>>, vector<1x32xf32>
    tpu.vector_store %arg3[%c1_14, %c64_15], %41 {strides = array<i32>} : memref<8x128xf32, #tpu.memory_space<vmem>>, vector<1x32xf32>,
    %c7_i32 = arith.constant 7 : i32
    %43 = arith.addi %0, %c7_i32 : i32
    %44 = arith.index_cast %43 : i32 to index
    %45 = memref.load %arg1[%44] : memref<32xi32, #tpu.memory_space<smem>>
    %46 = arith.index_cast %45 : i32 to index
    %c0_16 = arith.constant 0 : index
    %47 = vector.load %arg2[%46, %c0_16] : memref<100x32xf32, #tpu.memory_space<vmem>>, vector<1x32xf32>
    %c1_17 = arith.constant 1 : index
    %c96_18 = arith.constant 96 : index
    %48 = vector.load %arg3[%c1_17, %c96_18] : memref<8x128xf32, #tpu.memory_space<vmem>>, vector<1x32xf32>
    tpu.vector_store %arg3[%c1_17, %c96_18], %47 {strides = array<i32>} : memref<8x128xf32, #tpu.memory_space<vmem>>, vector<1x32xf32>,
    %c8_i32 = arith.constant 8 : i32
    %49 = arith.addi %0, %c8_i32 : i32
    %50 = arith.index_cast %49 : i32 to index
    %51 = memref.load %arg1[%50] : memref<32xi32, #tpu.memory_space<smem>>
    %52 = arith.index_cast %51 : i32 to index
    %c0_19 = arith.constant 0 : index
    %53 = vector.load %arg2[%52, %c0_19] : memref<100x32xf32, #tpu.memory_space<vmem>>, vector<1x32xf32>
    %c2 = arith.constant 2 : index
    %c0_20 = arith.constant 0 : index
    %54 = vector.load %arg3[%c2, %c0_20] : memref<8x128xf32, #tpu.memory_space<vmem>>, vector<1x32xf32>
    tpu.vector_store %arg3[%c2, %c0_20], %53 {strides = array<i32>} : memref<8x128xf32, #tpu.memory_space<vmem>>, vector<1x32xf32>,
    %c9_i32 = arith.constant 9 : i32
    %55 = arith.addi %0, %c9_i32 : i32
    %56 = arith.index_cast %55 : i32 to index
    %57 = memref.load %arg1[%56] : memref<32xi32, #tpu.memory_space<smem>>
    %58 = arith.index_cast %57 : i32 to index
    %c0_21 = arith.constant 0 : index
    %59 = vector.load %arg2[%58, %c0_21] : memref<100x32xf32, #tpu.memory_space<vmem>>, vector<1x32xf32>
    %c2_22 = arith.constant 2 : index
    %c32_23 = arith.constant 32 : index
    %60 = vector.load %arg3[%c2_22, %c32_23] : memref<8x128xf32, #tpu.memory_space<vmem>>, vector<1x32xf32>
    tpu.vector_store %arg3[%c2_22, %c32_23], %59 {strides = array<i32>} : memref<8x128xf32, #tpu.memory_space<vmem>>, vector<1x32xf32>,
    %c10_i32 = arith.constant 10 : i32
    %61 = arith.addi %0, %c10_i32 : i32
    %62 = arith.index_cast %61 : i32 to index
    %63 = memref.load %arg1[%62] : memref<32xi32, #tpu.memory_space<smem>>
    %64 = arith.index_cast %63 : i32 to index
    %c0_24 = arith.constant 0 : index
    %65 = vector.load %arg2[%64, %c0_24] : memref<100x32xf32, #tpu.memory_space<vmem>>, vector<1x32xf32>
    %c2_25 = arith.constant 2 : index
    %c64_26 = arith.constant 64 : index
    %66 = vector.load %arg3[%c2_25, %c64_26] : memref<8x128xf32, #tpu.memory_space<vmem>>, vector<1x32xf32>
    tpu.vector_store %arg3[%c2_25, %c64_26], %65 {strides = array<i32>} : memref<8x128xf32, #tpu.memory_space<vmem>>, vector<1x32xf32>,
    %c11_i32 = arith.constant 11 : i32
    %67 = arith.addi %0, %c11_i32 : i32
    %68 = arith.index_cast %67 : i32 to index
    %69 = memref.load %arg1[%68] : memref<32xi32, #tpu.memory_space<smem>>
    %70 = arith.index_cast %69 : i32 to index
    %c0_27 = arith.constant 0 : index
    %71 = vector.load %arg2[%70, %c0_27] : memref<100x32xf32, #tpu.memory_space<vmem>>, vector<1x32xf32>
    %c2_28 = arith.constant 2 : index
    %c96_29 = arith.constant 96 : index
    %72 = vector.load %arg3[%c2_28, %c96_29] : memref<8x128xf32, #tpu.memory_space<vmem>>, vector<1x32xf32>
    tpu.vector_store %arg3[%c2_28, %c96_29], %71 {strides = array<i32>} : memref<8x128xf32, #tpu.memory_space<vmem>>, vector<1x32xf32>,
    %c12_i32 = arith.constant 12 : i32
    %73 = arith.addi %0, %c12_i32 : i32
    %74 = arith.index_cast %73 : i32 to index
    %75 = memref.load %arg1[%74] : memref<32xi32, #tpu.memory_space<smem>>
    %76 = arith.index_cast %75 : i32 to index
    %c0_30 = arith.constant 0 : index
    %77 = vector.load %arg2[%76, %c0_30] : memref<100x32xf32, #tpu.memory_space<vmem>>, vector<1x32xf32>
    %c3 = arith.constant 3 : index
    %c0_31 = arith.constant 0 : index
    %78 = vector.load %arg3[%c3, %c0_31] : memref<8x128xf32, #tpu.memory_space<vmem>>, vector<1x32xf32>
    tpu.vector_store %arg3[%c3, %c0_31], %77 {strides = array<i32>} : memref<8x128xf32, #tpu.memory_space<vmem>>, vector<1x32xf32>,
    %c13_i32 = arith.constant 13 : i32
    %79 = arith.addi %0, %c13_i32 : i32
    %80 = arith.index_cast %79 : i32 to index
    %81 = memref.load %arg1[%80] : memref<32xi32, #tpu.memory_space<smem>>
    %82 = arith.index_cast %81 : i32 to index
    %c0_32 = arith.constant 0 : index
    %83 = vector.load %arg2[%82, %c0_32] : memref<100x32xf32, #tpu.memory_space<vmem>>, vector<1x32xf32>
    %c3_33 = arith.constant 3 : index
    %c32_34 = arith.constant 32 : index
    %84 = vector.load %arg3[%c3_33, %c32_34] : memref<8x128xf32, #tpu.memory_space<vmem>>, vector<1x32xf32>
    tpu.vector_store %arg3[%c3_33, %c32_34], %83 {strides = array<i32>} : memref<8x128xf32, #tpu.memory_space<vmem>>, vector<1x32xf32>,
    %c14_i32 = arith.constant 14 : i32
    %85 = arith.addi %0, %c14_i32 : i32
    %86 = arith.index_cast %85 : i32 to index
    %87 = memref.load %arg1[%86] : memref<32xi32, #tpu.memory_space<smem>>
    %88 = arith.index_cast %87 : i32 to index
    %c0_35 = arith.constant 0 : index
    %89 = vector.load %arg2[%88, %c0_35] : memref<100x32xf32, #tpu.memory_space<vmem>>, vector<1x32xf32>
    %c3_36 = arith.constant 3 : index
    %c64_37 = arith.constant 64 : index
    %90 = vector.load %arg3[%c3_36, %c64_37] : memref<8x128xf32, #tpu.memory_space<vmem>>, vector<1x32xf32>
    tpu.vector_store %arg3[%c3_36, %c64_37], %89 {strides = array<i32>} : memref<8x128xf32, #tpu.memory_space<vmem>>, vector<1x32xf32>,
    %c15_i32 = arith.constant 15 : i32
    %91 = arith.addi %0, %c15_i32 : i32
    %92 = arith.index_cast %91 : i32 to index
    %93 = memref.load %arg1[%92] : memref<32xi32, #tpu.memory_space<smem>>
    %94 = arith.index_cast %93 : i32 to index
    %c0_38 = arith.constant 0 : index
    %95 = vector.load %arg2[%94, %c0_38] : memref<100x32xf32, #tpu.memory_space<vmem>>, vector<1x32xf32>
    %c3_39 = arith.constant 3 : index
    %c96_40 = arith.constant 96 : index
    %96 = vector.load %arg3[%c3_39, %c96_40] : memref<8x128xf32, #tpu.memory_space<vmem>>, vector<1x32xf32>
    tpu.vector_store %arg3[%c3_39, %c96_40], %95 {strides = array<i32>} : memref<8x128xf32, #tpu.memory_space<vmem>>, vector<1x32xf32>,
    %c16_i32 = arith.constant 16 : i32
    %97 = arith.addi %0, %c16_i32 : i32
    %98 = arith.index_cast %97 : i32 to index
    %99 = memref.load %arg1[%98] : memref<32xi32, #tpu.memory_space<smem>>
    %100 = arith.index_cast %99 : i32 to index
    %c0_41 = arith.constant 0 : index
    %101 = vector.load %arg2[%100, %c0_41] : memref<100x32xf32, #tpu.memory_space<vmem>>, vector<1x32xf32>
    %c4 = arith.constant 4 : index
    %c0_42 = arith.constant 0 : index
    %102 = vector.load %arg3[%c4, %c0_42] : memref<8x128xf32, #tpu.memory_space<vmem>>, vector<1x32xf32>
    tpu.vector_store %arg3[%c4, %c0_42], %101 {strides = array<i32>} : memref<8x128xf32, #tpu.memory_space<vmem>>, vector<1x32xf32>,
    %c17_i32 = arith.constant 17 : i32
    %103 = arith.addi %0, %c17_i32 : i32
    %104 = arith.index_cast %103 : i32 to index
    %105 = memref.load %arg1[%104] : memref<32xi32, #tpu.memory_space<smem>>
    %106 = arith.index_cast %105 : i32 to index
    %c0_43 = arith.constant 0 : index
    %107 = vector.load %arg2[%106, %c0_43] : memref<100x32xf32, #tpu.memory_space<vmem>>, vector<1x32xf32>
    %c4_44 = arith.constant 4 : index
    %c32_45 = arith.constant 32 : index
    %108 = vector.load %arg3[%c4_44, %c32_45] : memref<8x128xf32, #tpu.memory_space<vmem>>, vector<1x32xf32>
    tpu.vector_store %arg3[%c4_44, %c32_45], %107 {strides = array<i32>} : memref<8x128xf32, #tpu.memory_space<vmem>>, vector<1x32xf32>,
    %c18_i32 = arith.constant 18 : i32
    %109 = arith.addi %0, %c18_i32 : i32
    %110 = arith.index_cast %109 : i32 to index
    %111 = memref.load %arg1[%110] : memref<32xi32, #tpu.memory_space<smem>>
    %112 = arith.index_cast %111 : i32 to index
    %c0_46 = arith.constant 0 : index
    %113 = vector.load %arg2[%112, %c0_46] : memref<100x32xf32, #tpu.memory_space<vmem>>, vector<1x32xf32>
    %c4_47 = arith.constant 4 : index
    %c64_48 = arith.constant 64 : index
    %114 = vector.load %arg3[%c4_47, %c64_48] : memref<8x128xf32, #tpu.memory_space<vmem>>, vector<1x32xf32>
    tpu.vector_store %arg3[%c4_47, %c64_48], %113 {strides = array<i32>} : memref<8x128xf32, #tpu.memory_space<vmem>>, vector<1x32xf32>,
    %c19_i32 = arith.constant 19 : i32
    %115 = arith.addi %0, %c19_i32 : i32
    %116 = arith.index_cast %115 : i32 to index
    %117 = memref.load %arg1[%116] : memref<32xi32, #tpu.memory_space<smem>>
    %118 = arith.index_cast %117 : i32 to index
    %c0_49 = arith.constant 0 : index
    %119 = vector.load %arg2[%118, %c0_49] : memref<100x32xf32, #tpu.memory_space<vmem>>, vector<1x32xf32>
    %c4_50 = arith.constant 4 : index
    %c96_51 = arith.constant 96 : index
    %120 = vector.load %arg3[%c4_50, %c96_51] : memref<8x128xf32, #tpu.memory_space<vmem>>, vector<1x32xf32>
    tpu.vector_store %arg3[%c4_50, %c96_51], %119 {strides = array<i32>} : memref<8x128xf32, #tpu.memory_space<vmem>>, vector<1x32xf32>,
    %c20_i32 = arith.constant 20 : i32
    %121 = arith.addi %0, %c20_i32 : i32
    %122 = arith.index_cast %121 : i32 to index
    %123 = memref.load %arg1[%122] : memref<32xi32, #tpu.memory_space<smem>>
    %124 = arith.index_cast %123 : i32 to index
    %c0_52 = arith.constant 0 : index
    %125 = vector.load %arg2[%124, %c0_52] : memref<100x32xf32, #tpu.memory_space<vmem>>, vector<1x32xf32>
    %c5 = arith.constant 5 : index
    %c0_53 = arith.constant 0 : index
    %126 = vector.load %arg3[%c5, %c0_53] : memref<8x128xf32, #tpu.memory_space<vmem>>, vector<1x32xf32>
    tpu.vector_store %arg3[%c5, %c0_53], %125 {strides = array<i32>} : memref<8x128xf32, #tpu.memory_space<vmem>>, vector<1x32xf32>,
    %c21_i32 = arith.constant 21 : i32
    %127 = arith.addi %0, %c21_i32 : i32
    %128 = arith.index_cast %127 : i32 to index
    %129 = memref.load %arg1[%128] : memref<32xi32, #tpu.memory_space<smem>>
    %130 = arith.index_cast %129 : i32 to index
    %c0_54 = arith.constant 0 : index
    %131 = vector.load %arg2[%130, %c0_54] : memref<100x32xf32, #tpu.memory_space<vmem>>, vector<1x32xf32>
    %c5_55 = arith.constant 5 : index
    %c32_56 = arith.constant 32 : index
    %132 = vector.load %arg3[%c5_55, %c32_56] : memref<8x128xf32, #tpu.memory_space<vmem>>, vector<1x32xf32>
    tpu.vector_store %arg3[%c5_55, %c32_56], %131 {strides = array<i32>} : memref<8x128xf32, #tpu.memory_space<vmem>>, vector<1x32xf32>,
    %c22_i32 = arith.constant 22 : i32
    %133 = arith.addi %0, %c22_i32 : i32
    %134 = arith.index_cast %133 : i32 to index
    %135 = memref.load %arg1[%134] : memref<32xi32, #tpu.memory_space<smem>>
    %136 = arith.index_cast %135 : i32 to index
    %c0_57 = arith.constant 0 : index
    %137 = vector.load %arg2[%136, %c0_57] : memref<100x32xf32, #tpu.memory_space<vmem>>, vector<1x32xf32>
    %c5_58 = arith.constant 5 : index
    %c64_59 = arith.constant 64 : index
    %138 = vector.load %arg3[%c5_58, %c64_59] : memref<8x128xf32, #tpu.memory_space<vmem>>, vector<1x32xf32>
    tpu.vector_store %arg3[%c5_58, %c64_59], %137 {strides = array<i32>} : memref<8x128xf32, #tpu.memory_space<vmem>>, vector<1x32xf32>,
    %c23_i32 = arith.constant 23 : i32
    %139 = arith.addi %0, %c23_i32 : i32
    %140 = arith.index_cast %139 : i32 to index
    %141 = memref.load %arg1[%140] : memref<32xi32, #tpu.memory_space<smem>>
    %142 = arith.index_cast %141 : i32 to index
    %c0_60 = arith.constant 0 : index
    %143 = vector.load %arg2[%142, %c0_60] : memref<100x32xf32, #tpu.memory_space<vmem>>, vector<1x32xf32>
    %c5_61 = arith.constant 5 : index
    %c96_62 = arith.constant 96 : index
    %144 = vector.load %arg3[%c5_61, %c96_62] : memref<8x128xf32, #tpu.memory_space<vmem>>, vector<1x32xf32>
    tpu.vector_store %arg3[%c5_61, %c96_62], %143 {strides = array<i32>} : memref<8x128xf32, #tpu.memory_space<vmem>>, vector<1x32xf32>,
    %c24_i32 = arith.constant 24 : i32
    %145 = arith.addi %0, %c24_i32 : i32
    %146 = arith.index_cast %145 : i32 to index
    %147 = memref.load %arg1[%146] : memref<32xi32, #tpu.memory_space<smem>>
    %148 = arith.index_cast %147 : i32 to index
    %c0_63 = arith.constant 0 : index
    %149 = vector.load %arg2[%148, %c0_63] : memref<100x32xf32, #tpu.memory_space<vmem>>, vector<1x32xf32>
    %c6 = arith.constant 6 : index
    %c0_64 = arith.constant 0 : index
    %150 = vector.load %arg3[%c6, %c0_64] : memref<8x128xf32, #tpu.memory_space<vmem>>, vector<1x32xf32>
    tpu.vector_store %arg3[%c6, %c0_64], %149 {strides = array<i32>} : memref<8x128xf32, #tpu.memory_space<vmem>>, vector<1x32xf32>,
    %c25_i32 = arith.constant 25 : i32
    %151 = arith.addi %0, %c25_i32 : i32
    %152 = arith.index_cast %151 : i32 to index
    %153 = memref.load %arg1[%152] : memref<32xi32, #tpu.memory_space<smem>>
    %154 = arith.index_cast %153 : i32 to index
    %c0_65 = arith.constant 0 : index
    %155 = vector.load %arg2[%154, %c0_65] : memref<100x32xf32, #tpu.memory_space<vmem>>, vector<1x32xf32>
    %c6_66 = arith.constant 6 : index
    %c32_67 = arith.constant 32 : index
    %156 = vector.load %arg3[%c6_66, %c32_67] : memref<8x128xf32, #tpu.memory_space<vmem>>, vector<1x32xf32>
    tpu.vector_store %arg3[%c6_66, %c32_67], %155 {strides = array<i32>} : memref<8x128xf32, #tpu.memory_space<vmem>>, vector<1x32xf32>,
    %c26_i32 = arith.constant 26 : i32
    %157 = arith.addi %0, %c26_i32 : i32
    %158 = arith.index_cast %157 : i32 to index
    %159 = memref.load %arg1[%158] : memref<32xi32, #tpu.memory_space<smem>>
    %160 = arith.index_cast %159 : i32 to index
    %c0_68 = arith.constant 0 : index
    %161 = vector.load %arg2[%160, %c0_68] : memref<100x32xf32, #tpu.memory_space<vmem>>, vector<1x32xf32>
    %c6_69 = arith.constant 6 : index
    %c64_70 = arith.constant 64 : index
    %162 = vector.load %arg3[%c6_69, %c64_70] : memref<8x128xf32, #tpu.memory_space<vmem>>, vector<1x32xf32>
    tpu.vector_store %arg3[%c6_69, %c64_70], %161 {strides = array<i32>} : memref<8x128xf32, #tpu.memory_space<vmem>>, vector<1x32xf32>,
    %c27_i32 = arith.constant 27 : i32
    %163 = arith.addi %0, %c27_i32 : i32
    %164 = arith.index_cast %163 : i32 to index
    %165 = memref.load %arg1[%164] : memref<32xi32, #tpu.memory_space<smem>>
    %166 = arith.index_cast %165 : i32 to index
    %c0_71 = arith.constant 0 : index
    %167 = vector.load %arg2[%166, %c0_71] : memref<100x32xf32, #tpu.memory_space<vmem>>, vector<1x32xf32>
    %c6_72 = arith.constant 6 : index
    %c96_73 = arith.constant 96 : index
    %168 = vector.load %arg3[%c6_72, %c96_73] : memref<8x128xf32, #tpu.memory_space<vmem>>, vector<1x32xf32>
    tpu.vector_store %arg3[%c6_72, %c96_73], %167 {strides = array<i32>} : memref<8x128xf32, #tpu.memory_space<vmem>>, vector<1x32xf32>,
    %c28_i32 = arith.constant 28 : i32
    %169 = arith.addi %0, %c28_i32 : i32
    %170 = arith.index_cast %169 : i32 to index
    %171 = memref.load %arg1[%170] : memref<32xi32, #tpu.memory_space<smem>>
    %172 = arith.index_cast %171 : i32 to index
    %c0_74 = arith.constant 0 : index
    %173 = vector.load %arg2[%172, %c0_74] : memref<100x32xf32, #tpu.memory_space<vmem>>, vector<1x32xf32>
    %c7 = arith.constant 7 : index
    %c0_75 = arith.constant 0 : index
    %174 = vector.load %arg3[%c7, %c0_75] : memref<8x128xf32, #tpu.memory_space<vmem>>, vector<1x32xf32>
    tpu.vector_store %arg3[%c7, %c0_75], %173 {strides = array<i32>} : memref<8x128xf32, #tpu.memory_space<vmem>>, vector<1x32xf32>,
    %c29_i32 = arith.constant 29 : i32
    %175 = arith.addi %0, %c29_i32 : i32
    %176 = arith.index_cast %175 : i32 to index
    %177 = memref.load %arg1[%176] : memref<32xi32, #tpu.memory_space<smem>>
    %178 = arith.index_cast %177 : i32 to index
    %c0_76 = arith.constant 0 : index
    %179 = vector.load %arg2[%178, %c0_76] : memref<100x32xf32, #tpu.memory_space<vmem>>, vector<1x32xf32>
    %c7_77 = arith.constant 7 : index
    %c32_78 = arith.constant 32 : index
    %180 = vector.load %arg3[%c7_77, %c32_78] : memref<8x128xf32, #tpu.memory_space<vmem>>, vector<1x32xf32>
    tpu.vector_store %arg3[%c7_77, %c32_78], %179 {strides = array<i32>} : memref<8x128xf32, #tpu.memory_space<vmem>>, vector<1x32xf32>,
    %c30_i32 = arith.constant 30 : i32
    %181 = arith.addi %0, %c30_i32 : i32
    %182 = arith.index_cast %181 : i32 to index
    %183 = memref.load %arg1[%182] : memref<32xi32, #tpu.memory_space<smem>>
    %184 = arith.index_cast %183 : i32 to index
    %c0_79 = arith.constant 0 : index
    %185 = vector.load %arg2[%184, %c0_79] : memref<100x32xf32, #tpu.memory_space<vmem>>, vector<1x32xf32>
    %c7_80 = arith.constant 7 : index
    %c64_81 = arith.constant 64 : index
    %186 = vector.load %arg3[%c7_80, %c64_81] : memref<8x128xf32, #tpu.memory_space<vmem>>, vector<1x32xf32>
    tpu.vector_store %arg3[%c7_80, %c64_81], %185 {strides = array<i32>} : memref<8x128xf32, #tpu.memory_space<vmem>>, vector<1x32xf32>,
    %c31_i32 = arith.constant 31 : i32
    %187 = arith.addi %0, %c31_i32 : i32
    %188 = arith.index_cast %187 : i32 to index
    %189 = memref.load %arg1[%188] : memref<32xi32, #tpu.memory_space<smem>>
    %190 = arith.index_cast %189 : i32 to index
    %c0_82 = arith.constant 0 : index
    %191 = vector.load %arg2[%190, %c0_82] : memref<100x32xf32, #tpu.memory_space<vmem>>, vector<1x32xf32>
    %c7_83 = arith.constant 7 : index
    %c96_84 = arith.constant 96 : index
    %192 = vector.load %arg3[%c7_83, %c96_84] : memref<8x128xf32, #tpu.memory_space<vmem>>, vector<1x32xf32>
    tpu.vector_store %arg3[%c7_83, %c96_84], %191 {strides = array<i32>} : memref<8x128xf32, #tpu.memory_space<vmem>>, vector<1x32xf32>,
    return
  }
  func.func @transform_0(%arg0: i32, %arg1: memref<32xi32, #tpu.memory_space<smem>>) -> (i32, i32) {
    %c0_i32 = arith.constant 0 : i32
    %c0_i32_0 = arith.constant 0 : i32
    %c0_i32_1 = arith.constant 0 : i32
    return %c0_i32, %c0_i32_0 : i32, i32
  }
  func.func @transform_1(%arg0: i32, %arg1: memref<32xi32, #tpu.memory_space<smem>>) -> (i32, i32) {
    %c0_i32 = arith.constant 0 : i32
    %c0_i32_0 = arith.constant 0 : i32
    return %arg0, %c0_i32 : i32, i32
  }
}

</mosaic_0001>

<bundles_post_ra>
// kernel: tpu_custom_call.1
= control target key start
LH: loop header
LB: loop body
LE: loop exit
PB: predicated region body
PF: predicated region fallthrough
CT: control target
= control target key end

     0   :  { %s402_s12 = smov [#allocation3]   ;;  %s580_s0 = inlined_call_operand.vmem [shape: s32[32], index: 0, kind: input, shape index: {}]   ;;  %s581_s1 = inlined_call_operand.vmem [shape: f32[100,32], index: 1, kind: input, shape index: {}]   ;;  %s582_s2 = inlined_call_operand.hbm [shape: f32[8,128], index: 2, kind: output, shape index: {}]  }
   0x1   :  { %s8_s11 = sshll.u32 %s580_s0, 4  ;;  %s9_s11 = int_to_ptr.vmem [resolvable:$true] %s8_s11 }
   0x2   :  { %11 = dma.vmem_to_smem %s9_s11, 16, %s402_s12, [#allocation2] }
   0x3   :  { %398 = dma.done.wait [#allocation2], 16 }
   0x4   :  { %399 = vsyncadd [#allocation2], 4294967280 }
   0x5   :  { %14 = sfence }
   0x6   :  { %s328_s13 = sld [smem:[#allocation3 + $0x3]] }
   0x7   :  { %15 = vsyncpa [#allocation5], 0  ;;  %s326_s14 = sld [smem:[#allocation3 + $0x1]]  ;;  %s403_s23 = smov 96   ;;  %vm22_vm0 = vcmask 253952   ;;  %vm32_vm1 = vcmask 516352  }
   0x8   :  { %s330_s15 = sld [smem:[#allocation3 + $0x5]]  ;;  %s404_s24 = smov 32   ;;  %vm42_vm2 = vcmask 778752   ;;  %vm52_vm3 = vcmask 1041152  }
   0x9   :  { %s327_s16 = sld [smem:[#allocation3 + $0x2]]  ;;  %s405_s9 = smov 64  }
   0xa   :  { %s331_s20 = sld [smem:[#allocation3 + $0x6]] }
   0xb   :  { %s332_s25 = sld [smem:[#allocation3 + $0x7]] }
   0xc   :  { %s46_s19 = scalar_lea.vmem %s581_s1, %s328_s13  ;;  %s335_s29 = sld [smem:[#allocation3 + $0xa]] }
   0xd   :  { %v47_v0 = vld [vmem:[%s46_s19] sm:$0x1]  ;;  %s26_s0 = scalar_lea.vmem %s581_s1, %s326_s14  ;;  %s334_s5 = sld [smem:[#allocation3 + $0x9]] }
   0xe   :  { %49 = vrot.lane.b32.xlu1 %v47_v0, %s403_s23  ;;  %v27_v1 = vld [vmem:[%s26_s0] sm:$0x1]  ;;  %s61_s28 = scalar_lea.vmem %s581_s1, %s330_s15  ;;  %s336_s13 = sld [smem:[#allocation3 + $0xb]] }
   0xf   :  { %29 = vrot.lane.b32.xlu0 %v27_v1, %s404_s24  ;;  %s36_s4 = scalar_lea.vmem %s581_s1, %s327_s16  ;;  %v62_v2 = vld [vmem:[%s61_s28] sm:$0x1]  ;;  %s342_s17 = sld [smem:[#allocation3 + $0x11]] }
  0x10   :  { %s70_s8 = scalar_lea.vmem %s581_s1, %s331_s20  ;;  %v37_v4 = vld [vmem:[%s36_s4] sm:$0x1]  ;;  %s338_s21 = sld [smem:[#allocation3 + $0xd]] }
  0x11   :  { %v71_v3 = vld [vmem:[%s70_s8] sm:$0x1]  ;;  %s79_s12 = scalar_lea.vmem %s581_s1, %s332_s25  ;;  %s346_s26 = sld [smem:[#allocation3 + $0x15]] }
  0x12   :  { %73 = vrot.lane.b32.xlu2 %v71_v3, %s405_s9  ;;  %s102_s16 = scalar_lea.vmem %s581_s1, %s335_s29  ;;  %v80_v5 = vld [vmem:[%s79_s12] sm:$0x1]  ;;  %s354_s30 = sld [smem:[#allocation3 + $0x1d]] }
  0x13   :  { %s93_s20 = scalar_lea.vmem %s581_s1, %s334_s5  ;;  %v103_v6 = vld [vmem:[%s102_s16] sm:$0x1]  ;;  %s350_s6 = sld [smem:[#allocation3 + $0x19]] }
  0x14   :  { %v94_v7 = vld [vmem:[%s93_s20] sm:$0x1]  ;;  %s111_s25 = scalar_lea.vmem %s581_s1, %s336_s13  ;;  %s339_s11 = sld [smem:[#allocation3 + $0xe]] }
  0x15   :  { %s157_s29 = scalar_lea.vmem %s581_s1, %s342_s17  ;;  %v112_v8 = vld [vmem:[%s111_s25] sm:$0x1]  ;;  %s347_s15 = sld [smem:[#allocation3 + $0x16]] }
  0x16   :  { %64 = vrot.lane.b32.xlu1 %v62_v2, %s404_s24  ;;  %s125_s5 = scalar_lea.vmem %s581_s1, %s338_s21  ;;  %v158_v9 = vld [vmem:[%s157_s29] sm:$0x1]  ;;  %s343_s19 = sld [smem:[#allocation3 + $0x12]] }
  0x17   :  { %39 = vrot.lane.b32.xlu0 %v37_v4, %s405_s9  ;;  %v126_v10 = vld [vmem:[%s125_s5] sm:$0x1]  ;;  %s189_s10 = scalar_lea.vmem %s581_s1, %s346_s26  ;;  %s351_s0 = sld [smem:[#allocation3 + $0x1a]] }
  0x18   :  { %s253_s14 = scalar_lea.vmem %s581_s1, %s354_s30  ;;  %v190_v11 = vld [vmem:[%s189_s10] sm:$0x1]  ;;  %s340_s28 = sld [smem:[#allocation3 + $0xf]] }
  0x19   :  { %s221_s18 = scalar_lea.vmem %s581_s1, %s350_s6  ;;  %v254_v12 = vld [vmem:[%s253_s14] sm:$0x1]  ;;  %s355_s4 = sld [smem:[#allocation3 + $0x1e]] }
  0x1a   :  { %82 = vrot.lane.b32.xlu2 %v80_v5, %s403_s23  ;;  %v222_v13 = vld [vmem:[%s221_s18] sm:$0x1]  ;;  %s134_s22 = scalar_lea.vmem %s581_s1, %s339_s11  ;;  %s344_s7 = sld [smem:[#allocation3 + $0x13]] }
  0x1b   :  { %s198_s27 = scalar_lea.vmem %s581_s1, %s347_s15  ;;  %v135_v14 = vld [vmem:[%s134_s22] sm:$0x1]  ;;  %s352_s12 = sld [smem:[#allocation3 + $0x1b]] }
  0x1c   :  { %s166_s3 = scalar_lea.vmem %s581_s1, %s343_s19  ;;  %v199_v15 = vld [vmem:[%s198_s27] sm:$0x1]  ;;  %s348_s16 = sld [smem:[#allocation3 + $0x17]] }
  0x1d   :  { %v167_v16 = vld [vmem:[%s166_s3] sm:$0x1]  ;;  %s356_s20 = sld [smem:[#allocation3 + $0x1f]] }
  0x1e   :  { %105 = vrot.lane.b32.xlu1 %v103_v6, %s405_s9  ;;  %s143_s11 = scalar_lea.vmem %s581_s1, %s340_s28  ;;  %s329_s3 = sld [smem:[#allocation3 + $0x4]] }
  0x1f   :  { %96 = vrot.lane.b32.xlu0 %v94_v7, %s404_s24  ;;  %s262_s15 = scalar_lea.vmem %s581_s1, %s355_s4  ;;  %v144_v18 = vld [vmem:[%s143_s11] sm:$0x1]  ;;  %s333_s10 = sld [smem:[#allocation3 + $0x8]] }
  0x20   :  { %v263_v19 = vld [vmem:[%s262_s15] sm:$0x1]  ;;  %s175_s19 = scalar_lea.vmem %s581_s1, %s344_s7  ;;  %s345_s11 = sld [smem:[#allocation3 + $0x14]] }
  0x21   :  { %v176_v20 = vld [vmem:[%s175_s19] sm:$0x1]  ;;  %s337_s15 = sld [smem:[#allocation3 + $0xc]]  ;;  %s285_s7 = sshll.u32 %s582_s2, 4  ;;  %s286_s7 = int_to_ptr.hbm [resolvable:$true] %s285_s7 }
  0x22   :  { %114 = vrot.lane.b32.xlu2 %v112_v8, %s403_s23  ;;  %s207_s27 = scalar_lea.vmem %s581_s1, %s348_s16  ;;  %s353_s16 = sld [smem:[#allocation3 + $0x1c]] }
  0x23   :  { %v208_v22 = vld [vmem:[%s207_s27] sm:$0x1]  ;;  %s271_s30 = scalar_lea.vmem %s581_s1, %s356_s20  ;;  %s349_s27 = sld [smem:[#allocation3 + $0x18]] }
  0x24   :  { %v272_v23 = vld [vmem:[%s271_s30] sm:$0x1]  ;;  %s56_s8 = scalar_lea.vmem %s581_s1, %s329_s3 }
  0x25   :  { %v57_v25 = vld [vmem:[%s56_s8] sm:$0x1]  ;;  %s88_s14 = scalar_lea.vmem %s581_s1, %s333_s10 }
  0x26   :  { %160 = vrot.lane.b32.xlu1 %v158_v9, %s404_s24  ;;  %58 = vst.msk [vmem:[#allocation4 + $0x1] sm:$0x1] %vm22_vm0, %v57_v25  ;;  %v89_v27 = vld [vmem:[%s88_s14] sm:$0x1]  ;;  %s184_s19 = scalar_lea.vmem %s581_s1, %s345_s11 }
  0x27   :  { %128 = vrot.lane.b32.xlu0 %v126_v10, %s404_s24  ;;  %90 = vst.msk [vmem:[#allocation4 + $0x2] sm:$0x1] %vm22_vm0, %v89_v27  ;;  %v185_v28 = vld [vmem:[%s184_s19] sm:$0x1]  ;;  %s120_s26 = scalar_lea.vmem %s581_s1, %s337_s15 }
  0x28   :  { %186 = vst.msk [vmem:[#allocation4 + $0x5] sm:$0x1] %vm22_vm0, %v185_v28  ;;  %s248_s30 = scalar_lea.vmem %s581_s1, %s353_s16  ;;  %v121_v31 = vld [vmem:[%s120_s26] sm:$0x1] }
  0x29   :  { %122 = vst.msk [vmem:[#allocation4 + $0x3] sm:$0x1] %vm22_vm0, %v121_v31  ;;  %v249_v32 = vld [vmem:[%s248_s30] sm:$0x1]  ;;  %s216_s4 = scalar_lea.vmem %s581_s1, %s349_s27 }
  0x2a   :  { %192 = vrot.lane.b32.xlu2 %v190_v11, %s404_s24  ;;  %250 = vst.msk [vmem:[#allocation4 + $0x7] sm:$0x1] %vm22_vm0, %v249_v32  ;;  %v217_v36 = vld [vmem:[%s216_s4] sm:$0x1] }
  0x2b   :  { %218 = vst.msk [vmem:[#allocation4 + $0x6] sm:$0x1] %vm22_vm0, %v217_v36 }
  0x2e   :  { %256 = vrot.lane.b32.xlu1 %v254_v12, %s404_s24 }
  0x2f   :  { %224 = vrot.lane.b32.xlu0 %v222_v13, %s404_s24  ;;  %s230_s24 = scalar_lea.vmem %s581_s1, %s351_s0  ;;  %s239_s0 = scalar_lea.vmem %s581_s1, %s352_s12 }
  0x30   :  { %v231_v17 = vld [vmem:[%s230_s24] sm:$0x1] }
  0x31   :  { %v240_v21 = vld [vmem:[%s239_s0] sm:$0x1] }
  0x32   :  { %137 = vrot.lane.b32.xlu2 %v135_v14, %s405_s9 }
  0x36   :  { %201 = vrot.lane.b32.xlu1 %v199_v15, %s405_s9 }
  0x37   :  { %169 = vrot.lane.b32.xlu0 %v167_v16, %s405_s9 }
  0x3a   :  { %233 = vrot.lane.b32.xlu2 %v231_v17, %s405_s9 }
  0x3e   :  { %146 = vrot.lane.b32.xlu1 %v144_v18, %s403_s23 }
  0x3f   :  { %265 = vrot.lane.b32.xlu0 %v263_v19, %s405_s9  ;;  %s19_s9 = sld [smem:[#allocation3]] }
  0x42   :  { %178 = vrot.lane.b32.xlu2 %v176_v20, %s403_s23 }
  0x45   :  { %s20_s6 = scalar_lea.vmem %s581_s1, %s19_s9 }
  0x46   :  { %242 = vrot.lane.b32.xlu1 %v240_v21, %s403_s23  ;;  %v21_v24 = vld [vmem:[%s20_s6] sm:$0x1] }
  0x47   :  { %210 = vrot.lane.b32.xlu0 %v208_v22, %s403_s23  ;;  %23 = vst.msk [vmem:[#allocation4] sm:$0x1] %vm22_vm0, %v21_v24 }
  0x4a   :  { %274 = vrot.lane.b32.xlu2 %v272_v23, %s403_s23  ;;  %s341_s23 = sld [smem:[#allocation3 + $0x10]] }
  0x50   :  { %s152_s22 = scalar_lea.vmem %s581_s1, %s341_s23  ;;  %s406_s1 = smov [#allocation4]  }
  0x51   :  { %v153_v29 = vld [vmem:[%s152_s22] sm:$0x1]  ;;  %s283_s5 = sshll.u32 %s406_s1, 4  ;;  %s284_s5 = int_to_ptr.vmem [resolvable:$true] %s283_s5 }
  0x52   :  { %154 = vst.msk [vmem:[#allocation4 + $0x4] sm:$0x1] %vm22_vm0, %v153_v29 }
  0x6c   :  { %v74_v26 = vpop.permute.xlu2 %73 }
  0x74   :  { %v83_v30 = vpop.permute.xlu2 %82 }
  0x7c   :  { %v115_v33 = vpop.permute.xlu2 %114 }
  0x80   :  { %v50_v34 = vpop.permute.xlu1 %49 }
  0x81   :  { %v30_v35 = vpop.permute.xlu0 %29 }
  0x82   :  { %33 = vst.msk [vmem:[#allocation4] sm:$0x1] %vm32_vm1, %v30_v35 }
  0x84   :  { %v193_v37 = vpop.permute.xlu2 %192 }
  0x85   :  { %195 = vst.msk [vmem:[#allocation4 + $0x5] sm:$0x1] %vm32_vm1, %v193_v37 }
  0x88   :  { %v65_v38 = vpop.permute.xlu1 %64 }
  0x89   :  { %67 = vst.msk [vmem:[#allocation4 + $0x1] sm:$0x1] %vm32_vm1, %v65_v38  ;;  %v40_v39 = vpop.permute.xlu0 %39 }
  0x8a   :  { %76 = vst.msk [vmem:[#allocation4 + $0x1] sm:$0x1] %vm42_vm2, %v74_v26 }
  0x8b   :  { %85 = vst.msk [vmem:[#allocation4 + $0x1] sm:$0x1] %vm52_vm3, %v83_v30 }
  0x8c   :  { %43 = vst.msk [vmem:[#allocation4] sm:$0x1] %vm42_vm2, %v40_v39  ;;  %v138_v42 = vpop.permute.xlu2 %137 }
  0x8d   :  { %53 = vst.msk [vmem:[#allocation4] sm:$0x1] %vm52_vm3, %v50_v34 }
  0x90   :  { %v106_v40 = vpop.permute.xlu1 %105 }
  0x91   :  { %v97_v41 = vpop.permute.xlu0 %96 }
  0x92   :  { %99 = vst.msk [vmem:[#allocation4 + $0x2] sm:$0x1] %vm32_vm1, %v97_v41 }
  0x93   :  { %108 = vst.msk [vmem:[#allocation4 + $0x2] sm:$0x1] %vm42_vm2, %v106_v40 }
  0x94   :  { %117 = vst.msk [vmem:[#allocation4 + $0x2] sm:$0x1] %vm52_vm3, %v115_v33  ;;  %v234_v45 = vpop.permute.xlu2 %233 }
  0x98   :  { %v161_v43 = vpop.permute.xlu1 %160 }
  0x99   :  { %163 = vst.msk [vmem:[#allocation4 + $0x4] sm:$0x1] %vm32_vm1, %v161_v43  ;;  %v129_v44 = vpop.permute.xlu0 %128 }
  0x9a   :  { %131 = vst.msk [vmem:[#allocation4 + $0x3] sm:$0x1] %vm32_vm1, %v129_v44 }
  0x9b   :  { %140 = vst.msk [vmem:[#allocation4 + $0x3] sm:$0x1] %vm42_vm2, %v138_v42 }
  0x9c   :  { %v179_v48 = vpop.permute.xlu2 %178 }
  0xa0   :  { %v257_v46 = vpop.permute.xlu1 %256 }
  0xa1   :  { %259 = vst.msk [vmem:[#allocation4 + $0x7] sm:$0x1] %vm32_vm1, %v257_v46  ;;  %v225_v47 = vpop.permute.xlu0 %224 }
  0xa2   :  { %227 = vst.msk [vmem:[#allocation4 + $0x6] sm:$0x1] %vm32_vm1, %v225_v47 }
  0xa3   :  { %236 = vst.msk [vmem:[#allocation4 + $0x6] sm:$0x1] %vm42_vm2, %v234_v45 }
  0xa4   :  { %v275_v52 = vpop.permute.xlu2 %274 }
  0xa8   :  { %v202_v49 = vpop.permute.xlu1 %201 }
  0xa9   :  { %204 = vst.msk [vmem:[#allocation4 + $0x5] sm:$0x1] %vm42_vm2, %v202_v49  ;;  %v170_v50 = vpop.permute.xlu0 %169 }
  0xaa   :  { %172 = vst.msk [vmem:[#allocation4 + $0x4] sm:$0x1] %vm42_vm2, %v170_v50 }
  0xab   :  { %181 = vst.msk [vmem:[#allocation4 + $0x4] sm:$0x1] %vm52_vm3, %v179_v48 }
  0xb0   :  { %v147_v51 = vpop.permute.xlu1 %146 }
  0xb1   :  { %149 = vst.msk [vmem:[#allocation4 + $0x3] sm:$0x1] %vm52_vm3, %v147_v51  ;;  %v266_v53 = vpop.permute.xlu0 %265 }
  0xb2   :  { %268 = vst.msk [vmem:[#allocation4 + $0x7] sm:$0x1] %vm42_vm2, %v266_v53 }
  0xb3   :  { %277 = vst.msk [vmem:[#allocation4 + $0x7] sm:$0x1] %vm52_vm3, %v275_v52 }
  0xb8   :  { %v243_v54 = vpop.permute.xlu1 %242 }
  0xb9   :  { %245 = vst.msk [vmem:[#allocation4 + $0x6] sm:$0x1] %vm52_vm3, %v243_v54  ;;  %v211_v55 = vpop.permute.xlu0 %210 }
  0xba   :  { %213 = vst.msk [vmem:[#allocation4 + $0x5] sm:$0x1] %vm52_vm3, %v211_v55 }
  0xbb   :  { %288 = dma.vmem_to_hbm [thread:$0]  %s284_s5, 128, %s286_s7, [#allocation5]  }
  0xbc   :  { %400 = dma.done.wait [#allocation5], 128  }
  0xbd   :  { %401 = vsyncadd [#allocation5], 4294967168 }
  0xbe   :  { %293 = vsyncpa [#allocation5], 1 }

</bundles_post_ra>
